<compile_context>
chip_gen: v5e
topology: v5e:2x2
jax: 0.10.0
libtpu: 0.0.40
codegen_flags: <defaults>
</compile_context>

<pallas_src>
import functools

import jax
import jax.numpy as jnp
from jax.experimental import pallas as pl
from jax.experimental.pallas import tpu as pltpu


def _round_up(x, m):
    return ((x + m - 1) // m) * m


def _qmlp_kernel(x_ref, w1_ref, b1_ref, w2_ref, b2_ref, w3_ref, b3_ref, o_ref):
    # Batch lives on the lane axis for every activation:
    #   x_ref  : (in_dim, TILE_B)   feature-major obs||act slab
    #   w1_ref : (H1, in_dim)       b1_ref : (H1, 1)
    #   w2_ref : (H2, H1)           b2_ref : (H2, 1)
    #   w3_ref : (1, H2)            b3_ref : (1,)  [SMEM scalar]
    #   o_ref  : (1, TILE_B)        lane-dense output slab
    h1 = jnp.dot(w1_ref[...], x_ref[...],
                 preferred_element_type=jnp.float32) + b1_ref[...]   # (H1, TILE_B)
    h1 = jnp.maximum(h1, 0.0)                                        # lane-dense ReLU

    h2 = jnp.dot(w2_ref[...], h1,
                 preferred_element_type=jnp.float32) + b2_ref[...]   # (H2, TILE_B)
    h2 = jnp.maximum(h2, 0.0)

    o_ref[...] = jnp.dot(w3_ref[...], h2,
                         preferred_element_type=jnp.float32) + b3_ref[0]  # (1, TILE_B)


# Per-grid-step VMEM budget used to auto-size the batch tile.  Conservative for
# v7x (64 MiB physical per TC); v5e/v6e (128 MiB) simply get more headroom.
_VMEM_BUDGET_BYTES = 40 * 1024 * 1024


@functools.partial(jax.jit, static_argnames=("tile_b",))
def bugged_mlp_q_function(obs, act, params, tile_b=None):
    """params = (w1, b1, w2, b2, w3, b3), PyTorch-Linear-like layout:
       w: (in_features, out_features), b: (1, out_features). Returns (B, 1)."""
    w1, b1, w2, b2, w3, b3 = params
    B, obs_dim = obs.shape
    act_dim = act.shape[1]
    in_dim = obs_dim + act_dim
    h1_dim = w1.shape[1]
    h2_dim = w2.shape[1]

    # One-off wrapper-side layout plumbing (cheap: the kernel is core-bound,
    # not HBM-bound): feature-major input slab, (out, in) weights, (out, 1)
    # biases, scalar head bias for SMEM.
    x_t = jnp.concatenate([obs, act], axis=-1).T      # (in_dim, B), batch on lanes
    w1_t = w1.T                                        # (H1, in_dim)
    b1_t = b1.reshape(h1_dim, 1)
    w2_t = w2.T                                        # (H2, H1)
    b2_t = b2.reshape(h2_dim, 1)
    w3_t = w3.T                                        # (1, H2)
    b3_s = b3.reshape(1)                               # scalar -> SMEM

    # ---- Batch tile selection -------------------------------------------------
    if tile_b is None:
        # f32 bytes per batch column per grid step: double-buffered input block
        # (in_dim padded to 8 sublanes), (H1, tb) + (H2, tb) intermediates, and
        # the double-buffered (1, tb) output block padded to 8 sublanes.
        per_col = 4 * (2 * _round_up(in_dim, 8) + h1_dim + h2_dim + 2 * 8)
        tile_b = (_VMEM_BUDGET_BYTES // per_col) // 256 * 256
        tile_b = max(256, min(32768, tile_b))
    else:
        tile_b = max(128, _round_up(tile_b, 128))      # keep tiles lane-aligned

    if B < 256:
        # Too small to split usefully: one tile, lane-aligned when B >= 128.
        tb = _round_up(B, 128) if B >= 128 else _round_up(B, 8)
    else:
        # At least 2 grid steps so the "parallel" axis shards across v7x's two
        # TensorCores; 256-aligned to match the 256-wide MXU on v6e/v7x.
        tb = min(tile_b, _round_up(-(-B // 2), 256))
    bp = _round_up(B, tb)
    if bp != B:
        # Pad only the already-materialized feature-major slab (fuses with the
        # concat/transpose copy above; no extra full copies of obs and act).
        x_t = jnp.pad(x_t, ((0, 0), (0, bp - B)))
    grid = (bp // tb,)

    full = lambda a: pl.BlockSpec(a.shape, lambda i: (0,) * a.ndim)  # resident weights

    flops = 2 * bp * (in_dim * h1_dim + h1_dim * h2_dim + h2_dim)
    bytes_accessed = 4 * (bp * (in_dim + 1)
                          + in_dim * h1_dim + h1_dim
                          + h1_dim * h2_dim + h2_dim
                          + h2_dim + 1)

    q_t = pl.pallas_call(
        _qmlp_kernel,
        out_shape=jax.ShapeDtypeStruct((1, bp), jnp.float32),
        grid=grid,
        in_specs=[
            pl.BlockSpec((in_dim, tb), lambda i: (0, i)),          # input slab tile
            full(w1_t), full(b1_t),
            full(w2_t), full(b2_t),
            full(w3_t),
            pl.BlockSpec(memory_space=pltpu.MemorySpace.SMEM),     # b3 scalar
        ],
        out_specs=pl.BlockSpec((1, tb), lambda i: (0, i)),
        compiler_params=pltpu.CompilerParams(
            dimension_semantics=("parallel",),
            vmem_limit_bytes=48 * 1024 * 1024),
        cost_estimate=pl.CostEstimate(
            flops=flops, transcendentals=0, bytes_accessed=bytes_accessed),
    )(x_t, w1_t, b1_t, w2_t, b2_t, w3_t, b3_s)

    # The intentional "bug": return the un-squeezed (B, 1) q.
    return q_t[0, :B].reshape(B, 1)


def init_params(key, obs_dim, act_dim, hidden_sizes):
    """Deterministic PyTorch-Linear-style init: U(-1/sqrt(fan_in), 1/sqrt(fan_in))."""
    sizes = [obs_dim + act_dim] + list(hidden_sizes) + [1]
    params = []
    for i in range(len(sizes) - 1):
        key, kw, kb = jax.random.split(key, 3)
        bound = 1.0 / jnp.sqrt(sizes[i])
        w = jax.random.uniform(kw, (sizes[i], sizes[i + 1]), jnp.float32,
                               minval=-bound, maxval=bound)
        b = jax.random.uniform(kb, (1, sizes[i + 1]), jnp.float32,
                               minval=-bound, maxval=bound)
        params += [w, b]
    return tuple(params)


if __name__ == "__main__":
    key = jax.random.PRNGKey(0)
    batch, obs_dim, act_dim = 8, 8, 4
    hidden_sizes = (32, 32)  # activation = ReLU

    kp, ko, ka = jax.random.split(key, 3)
    params = init_params(kp, obs_dim, act_dim, hidden_sizes)
    obs = jax.random.normal(ko, (batch, obs_dim), jnp.float32)
    act = jax.random.normal(ka, (batch, act_dim), jnp.float32)

    def ref_fn(o, a):
        x = jnp.concatenate([o, a], axis=-1)
        w1, b1, w2, b2, w3, b3 = params
        h = jnp.maximum(x @ w1 + b1, 0.0)
        h = jnp.maximum(h @ w2 + b2, 0.0)
        return h @ w3 + b3  # (B, 1): intentionally un-squeezed, matching the bug

    # Small single-tile case (auto tile_b).
    q = bugged_mlp_q_function(obs, act, params)
    jax.block_until_ready(q)
    assert q.shape == (batch, 1), q.shape
    # atol covers f32 accumulation-order differences from the transposed matmuls.
    assert jnp.allclose(q, ref_fn(obs, act), atol=1e-4), "mismatch vs reference"

    # Multi-tile + ragged-batch path: 3 tiles of 128 rows, padded tail sliced off.
    kb, ko2, ka2 = jax.random.split(jax.random.PRNGKey(1), 3)
    obs2 = jax.random.normal(ko2, (300, obs_dim), jnp.float32)
    act2 = jax.random.normal(ka2, (300, act_dim), jnp.float32)
    q2 = bugged_mlp_q_function(obs2, act2, params, tile_b=128)
    jax.block_until_ready(q2)
    assert q2.shape == (300, 1), q2.shape
    assert jnp.allclose(q2, ref_fn(obs2, act2), atol=1e-4), "tiled mismatch vs reference"

    # Auto-tiled moderate batch (>= 2 grid steps for 2-TC sharding on v7x).
    q3 = bugged_mlp_q_function(obs2, act2, params)
    jax.block_until_ready(q3)
    assert q3.shape == (300, 1), q3.shape
    assert jnp.allclose(q3, ref_fn(obs2, act2), atol=1e-4), "auto-tile mismatch vs reference"

    print("KERNEL_OK")
</pallas_src>

<mosaic_0001>
module attributes {stable_mosaic.version = 11 : i64} {
  func.func @_qmlp_kernel(%arg0: i32, %arg1: memref<12x8xf32, #tpu.memory_space<vmem>>, %arg2: memref<32x12xf32, #tpu.memory_space<vmem>>, %arg3: memref<32x1xf32, #tpu.memory_space<vmem>>, %arg4: memref<32x32xf32, #tpu.memory_space<vmem>>, %arg5: memref<32x1xf32, #tpu.memory_space<vmem>>, %arg6: memref<1x32xf32, #tpu.memory_space<vmem>>, %arg7: memref<1xf32, #tpu.memory_space<smem>>, %arg8: memref<1x8xf32, #tpu.memory_space<vmem>>) attributes {dimension_semantics = [#tpu.dimension_semantics<parallel>], iteration_bounds = array<i64: 1>, scalar_prefetch = 0 : i64, scratch_operands = 0 : i64, tpu.core_type = #tpu.core_type<tc>, window_params = [{transform_indices = @transform_0, window_bounds = array<i64: 12, 8>}, {pipeline_mode = #tpu.pipeline_mode<synchronous>, transform_indices = @transform_1, window_bounds = array<i64: 32, 12>}, {pipeline_mode = #tpu.pipeline_mode<synchronous>, transform_indices = @transform_2, window_bounds = array<i64: 32, 1>}, {pipeline_mode = #tpu.pipeline_mode<synchronous>, transform_indices = @transform_3, window_bounds = array<i64: 32, 32>}, {pipeline_mode = #tpu.pipeline_mode<synchronous>, transform_indices = @transform_4, window_bounds = array<i64: 32, 1>}, {pipeline_mode = #tpu.pipeline_mode<synchronous>, transform_indices = @transform_5, window_bounds = array<i64: 1, 32>}, {transform_indices = @transform_6, window_bounds = array<i64: 1>}, {transform_indices = @transform_7, window_bounds = array<i64: 1, 8>}]} {
    %c0 = arith.constant 0 : index
    %c0_0 = arith.constant 0 : index
    %0 = vector.load %arg2[%c0, %c0_0] : memref<32x12xf32, #tpu.memory_space<vmem>>, vector<32x12xf32>
    %c0_1 = arith.constant 0 : index
    %c0_2 = arith.constant 0 : index
    %1 = vector.load %arg1[%c0_1, %c0_2] : memref<12x8xf32, #tpu.memory_space<vmem>>, vector<12x8xf32>
    %cst = arith.constant dense<0.000000e+00> : vector<32x8xf32>
    %2 = tpu.matmul %0, %1, %cst {dimension_numbers = #tpu.dot_dimension_numbers<[1], [0], [0], [1], [0, 0, 1, 1], [], []>} : vector<32x12xf32>, vector<12x8xf32>, vector<32x8xf32> -> vector<32x8xf32>
    %c0_3 = arith.constant 0 : index
    %c0_4 = arith.constant 0 : index
    %3 = vector.load %arg3[%c0_3, %c0_4] : memref<32x1xf32, #tpu.memory_space<vmem>>, vector<32x1xf32>
    %4 = vector.broadcast %3 : vector<32x1xf32> to vector<32x8xf32>
    %5 = arith.addf %2, %4 : vector<32x8xf32>
    %cst_5 = arith.constant 0.000000e+00 : f32
    %6 = vector.broadcast %cst_5 : f32 to vector<32x8xf32>
    %7 = arith.maximumf %5, %6 : vector<32x8xf32>
    %c0_6 = arith.constant 0 : index
    %c0_7 = arith.constant 0 : index
    %8 = vector.load %arg4[%c0_6, %c0_7] : memref<32x32xf32, #tpu.memory_space<vmem>>, vector<32x32xf32>
    %cst_8 = arith.constant dense<0.000000e+00> : vector<32x8xf32>
    %9 = tpu.matmul %8, %7, %cst_8 {dimension_numbers = #tpu.dot_dimension_numbers<[1], [0], [0], [1], [0, 0, 1, 1], [], []>} : vector<32x32xf32>, vector<32x8xf32>, vector<32x8xf32> -> vector<32x8xf32>
    %c0_9 = arith.constant 0 : index
    %c0_10 = arith.constant 0 : index
    %10 = vector.load %arg5[%c0_9, %c0_10] : memref<32x1xf32, #tpu.memory_space<vmem>>, vector<32x1xf32>
    %11 = vector.broadcast %10 : vector<32x1xf32> to vector<32x8xf32>
    %12 = arith.addf %9, %11 : vector<32x8xf32>
    %cst_11 = arith.constant 0.000000e+00 : f32
    %13 = vector.broadcast %cst_11 : f32 to vector<32x8xf32>
    %14 = arith.maximumf %12, %13 : vector<32x8xf32>
    %c0_12 = arith.constant 0 : index
    %c0_13 = arith.constant 0 : index
    %15 = vector.load %arg6[%c0_12, %c0_13] : memref<1x32xf32, #tpu.memory_space<vmem>>, vector<1x32xf32>
    %cst_14 = arith.constant dense<0.000000e+00> : vector<1x8xf32>
    %16 = tpu.matmul %15, %14, %cst_14 {dimension_numbers = #tpu.dot_dimension_numbers<[1], [0], [0], [1], [0, 0, 1, 1], [], []>} : vector<1x32xf32>, vector<32x8xf32>, vector<1x8xf32> -> vector<1x8xf32>
    %c0_15 = arith.constant 0 : index
    %17 = memref.load %arg7[%c0_15] : memref<1xf32, #tpu.memory_space<smem>>
    %18 = vector.broadcast %17 : f32 to vector<1x8xf32>
    %19 = arith.addf %16, %18 : vector<1x8xf32>
    %c0_16 = arith.constant 0 : index
    %c0_17 = arith.constant 0 : index
    %20 = vector.load %arg8[%c0_16, %c0_17] : memref<1x8xf32, #tpu.memory_space<vmem>>, vector<1x8xf32>
    tpu.vector_store %arg8[%c0_16, %c0_17], %19 {strides = array<i32>} : memref<1x8xf32, #tpu.memory_space<vmem>>, vector<1x8xf32>,
    return
  }
  func.func @transform_0(%arg0: i32) -> (i32, i32) {
    %c0_i32 = arith.constant 0 : i32
    %c0_i32_0 = arith.constant 0 : i32
    return %c0_i32, %arg0 : i32, i32
  }
  func.func @transform_1(%arg0: i32) -> (i32, i32) {
    %c0_i32 = arith.constant 0 : i32
    %c0_i32_0 = arith.constant 0 : i32
    %c0_i32_1 = arith.constant 0 : i32
    return %c0_i32, %c0_i32_0 : i32, i32
  }
  func.func @transform_2(%arg0: i32) -> (i32, i32) {
    %c0_i32 = arith.constant 0 : i32
    %c0_i32_0 = arith.constant 0 : i32
    %c0_i32_1 = arith.constant 0 : i32
    return %c0_i32, %c0_i32_0 : i32, i32
  }
  func.func @transform_3(%arg0: i32) -> (i32, i32) {
    %c0_i32 = arith.constant 0 : i32
    %c0_i32_0 = arith.constant 0 : i32
    %c0_i32_1 = arith.constant 0 : i32
    return %c0_i32, %c0_i32_0 : i32, i32
  }
  func.func @transform_4(%arg0: i32) -> (i32, i32) {
    %c0_i32 = arith.constant 0 : i32
    %c0_i32_0 = arith.constant 0 : i32
    %c0_i32_1 = arith.constant 0 : i32
    return %c0_i32, %c0_i32_0 : i32, i32
  }
  func.func @transform_5(%arg0: i32) -> (i32, i32) {
    %c0_i32 = arith.constant 0 : i32
    %c0_i32_0 = arith.constant 0 : i32
    %c0_i32_1 = arith.constant 0 : i32
    return %c0_i32, %c0_i32_0 : i32, i32
  }
  func.func @transform_6(%arg0: i32) -> i32 {
    %c0_i32 = arith.constant 0 : i32
    %c0_i32_0 = arith.constant 0 : i32
    return %c0_i32 : i32
  }
  func.func @transform_7(%arg0: i32) -> (i32, i32) {
    %c0_i32 = arith.constant 0 : i32
    %c0_i32_0 = arith.constant 0 : i32
    return %c0_i32, %arg0 : i32, i32
  }
}

</mosaic_0001>

<bundles_post_ra>
// kernel: bugged_mlp_q_function.1
= control target key start
LH: loop header
LB: loop body
LE: loop exit
PB: predicated region body
PF: predicated region fallthrough
CT: control target
= control target key end

     0   :  { %vm71_vm0 = vcmask 1043456   ;;  %vm58_vm1 = vcmask 97280   ;;  %v277_v5 = vmov 0   ;;  %s391_s0 = inlined_call_operand.vmem [shape: f32[12,8], index: 0, kind: input, shape index: {}]   ;;  %s392_s1 = inlined_call_operand.vmem [shape: f32[32,12], index: 1, kind: input, shape index: {}]   ;;  %s393_s2 = inlined_call_operand.vmem [shape: f32[32,1], index: 2, kind: input, shape index: {}]   ;;  %s394_s3 = inlined_call_operand.vmem [shape: f32[32,32], index: 3, kind: input, shape index: {}]   ;;  %s395_s4 = inlined_call_operand.vmem [shape: f32[32,1], index: 4, kind: input, shape index: {}]   ;;  %s396_s5 = inlined_call_operand.vmem [shape: f32[1,32], index: 5, kind: input, shape index: {}]   ;;  %s397_s6 = inlined_call_operand.<no memory space> [shape: f32[1], index: 6, kind: input, shape index: {}]   ;;  %s398_s7 = inlined_call_operand.hbm [shape: f32[1,8], index: 7, kind: output, shape index: {}]  }
   0x1   :  { %v33_v0 = vld [vmem:[%s391_s0 + $0x8] sm:$0xf]  ;;  %v32_v1 = vld [vmem:[%s391_s0] sm:$0xff]  ;;  %v37_v3 = vld [vmem:[%s393_s2 + $0x18] sm:$0xff]  ;;  %249 = vset.pattern.permute.xlu1 %v277_v5  ;;  %248 = vset.pattern.permute.xlu0 %v277_v5 }
   0x2   :  { %226 = vmatpush.msk.msra.mxu0 %vm71_vm0, %v33_v0  ;;  %v28_v2 = vld [vmem:[%s392_s1] sm:$0xff]  ;;  %v35_v4 = vld [vmem:[%s393_s2 + $0x8] sm:$0xff]  ;;  %236 = vmatpush.msk.msra.mxu1 %vm71_vm0, %v33_v0  ;;  %v31_v6 = vld [vmem:[%s392_s1 + $0x18] sm:$0xff] }
   0x3   :  { %55 = vperm.xlu0 %248, %v37_v3   ;;  %45 = vperm.xlu1 %249, %v35_v4  }
   0x4   :  { %90 = vmatpush.msra.mxu0 %v32_v1 }
   0x5   :  { %227 = vmatmul.msk.f32.vlgmr.msra.gmra.mxu0 %vm58_vm1, %v28_v2 }
   0x6   :  { %13 = vsyncpa [#allocation4], 0  ;;  %237 = vmatpush.msra.mxu1 %v32_v1  ;;  %250 = vset.pattern.permute.xlu2 %v277_v5  ;;  %v36_v7 = vld [vmem:[%s393_s2 + $0x10] sm:$0xff]  ;;  %v29_v8 = vld [vmem:[%s392_s1 + $0x8] sm:$0xff]  ;;  %vm136_vm2 = vcmask 261120   ;;  %v184_v52 = vstv %s397_s6  ;;  %s278_s12 = smov [#allocation3]  }
   0x7   :  { %230 = vmatmul.msk.f32.vlgmr.msra.gmra.mxu1 %vm58_vm1, %v31_v6  ;;  %v34_v9 = vld [vmem:[%s393_s2] sm:$0xff]  ;;  %v113_v10 = vld [vmem:[%s395_s4 + $0x8] sm:$0xff]  ;;  %v30_v11 = vld [vmem:[%s392_s1 + $0x10] sm:$0xff]  ;;  %s215_s13 = sshll.u32 %s278_s12, 4  ;;  %s217_s16 = sshll.u32 %s398_s7, 4  ;;  %vm208_vm3 = vcmask 57344   ;;  %s216_s13 = int_to_ptr.vmem [resolvable:$true] %s215_s13  ;;  %s218_s16 = int_to_ptr.hbm [resolvable:$true] %s217_s16 }
   0x8   :  { %v112_v12 = vld [vmem:[%s395_s4] sm:$0xff]  ;;  %v115_v17 = vld [vmem:[%s395_s4 + $0x18] sm:$0xff]  ;;  %v114_v21 = vld [vmem:[%s395_s4 + $0x10] sm:$0xff] }
   0x9   :  { %133 = vperm.xlu2 %250, %v115_v17   ;;  %v108_v31 = vld [vmem:[%s394_s3] sm:$0xff]  ;;  %v109_v32 = vld [vmem:[%s394_s3 + $0x8] sm:$0xff]  ;;  %v110_v33 = vld [vmem:[%s394_s3 + $0x10] sm:$0xff] }
   0xa   :  { %v111_v34 = vld [vmem:[%s394_s3 + $0x18] sm:$0xff]  ;;  %v182_v51 = vld [vmem:[%s396_s5] sm:$0x1] }
   0xb   :  { %50 = vperm.xlu0 %248, %v36_v7   ;;  %40 = vperm.xlu1 %249, %v34_v9  }
   0xd   :  { %228 = vmatmul.msk.f32.gmra.mxu0 %vm58_vm1, %v29_v8 }
  0x11   :  { %128 = vperm.xlu2 %250, %v114_v21  }
  0x13   :  { %123 = vperm.xlu0 %248, %v113_v10   ;;  %118 = vperm.xlu1 %249, %v112_v12  }
  0x15   :  { %229 = vmatmul.msk.f32.gmra.mxu0 %vm58_vm1, %v30_v11 }
  0x63   :  { %v134_v35 = vpop.permute.xlu2 %133 }
  0x6b   :  { %v129_v37 = vpop.permute.xlu2 %128 }
  0x75   :  { %v56_v14 = vpop.permute.xlu0 %55  ;;  %v46_v19 = vpop.permute.xlu1 %45 }
  0x7d   :  { %v51_v22 = vpop.permute.xlu0 %50  ;;  %v41_v23 = vpop.permute.xlu1 %40 }
  0x82   :  { %v92_v13 = vpop.f32.mrf.mxu0 }
  0x83   :  { %v93_v27 = vadd.f32 %v92_v13, %v41_v23 }
  0x84   :  { %v101_v15 = vpop.f32.mrf.mxu1 }
  0x85   :  { %v102_v16 = vadd.f32 %v101_v15, %v56_v14  ;;  %v104_v30 = vmax.f32 %v93_v27, 0.0  ;;  %v124_v42 = vpop.permute.xlu0 %123  ;;  %v119_v46 = vpop.permute.xlu1 %118 }
  0x87   :  { %v107_v18 = vmax.f32 %v102_v16, 0.0 }
  0x89   :  { %161 = vmatpush.msrb.mxu1 %v107_v18  ;;  %238 = vmatpush.msra.mxu2 %v107_v18 }
  0x8a   :  { %v95_v20 = vpop.f32.mrf.mxu0  ;;  %239 = vmatpush.msra.mxu3 %v107_v18 }
  0x8b   :  { %v96_v25 = vadd.f32 %v95_v20, %v46_v19 }
  0x8d   :  { %v105_v29 = vmax.f32 %v96_v25, 0.0 }
  0x92   :  { %v98_v24 = vpop.f32.mrf.mxu0 }
  0x93   :  { %v99_v26 = vadd.f32 %v98_v24, %v51_v22 }
  0x95   :  { %v106_v28 = vmax.f32 %v99_v26, 0.0 }
  0x97   :  { %162 = vmatpush.msrb.mxu1 %v106_v28  ;;  %240 = vmatpush.msra.mxu2 %v106_v28 }
  0x98   :  { %241 = vmatpush.msra.mxu3 %v106_v28 }
  0x99   :  { %163 = vmatpush.msrb.mxu1 %v105_v29  ;;  %242 = vmatpush.msra.mxu2 %v105_v29 }
  0x9a   :  { %243 = vmatpush.msra.mxu3 %v105_v29 }
  0x9b   :  { %164 = vmatpush.msrb.mxu1 %v104_v30  ;;  %244 = vmatpush.msra.mxu2 %v104_v30 }
  0x9c   :  { %245 = vmatpush.msra.mxu3 %v104_v30  ;;  %231 = vmatmul.msk.f32.vlgmr.msrb.gmra.mxu1 %vm136_vm2, %v108_v31 }
  0x9d   :  { %232 = vmatmul.msk.f32.vlgmr.msra.gmra.mxu2 %vm136_vm2, %v109_v32  ;;  %233 = vmatmul.msk.f32.vlgmr.msra.gmra.mxu3 %vm136_vm2, %v110_v33 }
  0xa5   :  { %234 = vmatmul.msk.f32.gmra.mxu3 %vm136_vm2, %v111_v34 }
 0x119   :  { %v166_v43 = vpop.f32.mrf.mxu1 }
 0x11a   :  { %v167_v47 = vadd.f32 %v166_v43, %v119_v46 }
 0x11c   :  { %v178_v50 = vmax.f32 %v167_v47, 0.0 }
 0x120   :  { %v172_v36 = vpop.f32.mrf.mxu3  ;;  %v169_v38 = vpop.f32.mrf.mxu2 }
 0x121   :  { %v173_v40 = vadd.f32 %v172_v36, %v129_v37  ;;  %v170_v44 = vadd.f32 %v169_v38, %v124_v42 }
 0x123   :  { %v180_v48 = vmax.f32 %v173_v40, 0.0  ;;  %v179_v49 = vmax.f32 %v170_v44, 0.0 }
 0x128   :  { %v175_v39 = vpop.f32.mrf.mxu3 }
 0x129   :  { %v176_v41 = vadd.f32 %v175_v39, %v134_v35 }
 0x12b   :  { %v181_v45 = vmax.f32 %v176_v41, 0.0 }
 0x12d   :  { %200 = vmatpush.msrb.mxu2 %v181_v45 }
 0x12f   :  { %201 = vmatpush.msrb.mxu2 %v180_v48 }
 0x131   :  { %202 = vmatpush.msrb.mxu2 %v179_v49 }
 0x133   :  { %203 = vmatpush.msrb.mxu2 %v178_v50 }
 0x134   :  { %235 = vmatmul.msk.f32.vlgmr.msrb.gmra.mxu2 %vm136_vm2, %v182_v51 }
 0x1b7   :  { %v205_v53 = vpop.f32.mrf.mxu2 }
 0x1b8   :  { %v206_v54 = vadd.f32 %v205_v53, %v184_v52 }
 0x1ba   :  { %209 = vst.msk [vmem:[#allocation3] sm:$0x1] %vm208_vm3, %v206_v54 }
 0x1bb   :  { %220 = dma.vmem_to_hbm [thread:$0]  %s216_s13, 16, %s218_s16, [#allocation4]  }
 0x1bc   :  { %275 = dma.done.wait [#allocation4], 16  }
 0x1bd   :  { %276 = vsyncadd [#allocation4], 4294967280 }
 0x1be   :  { %225 = vsyncpa [#allocation4], 1 }

</bundles_post_ra>
